<compile_context>
chip_gen: v6e
topology: v6e:2x2x1
jax: 0.10.0
libtpu: 0.0.40
codegen_flags: <defaults>
</compile_context>

<pallas_src>
import functools

import jax
import jax.numpy as jnp
from jax.experimental import pallas as pl
from jax.experimental.pallas import tpu as pltpu


def _cdiv(a, b):
    return -(-a // b)


def _round_up(x, m):
    return ((x + m - 1) // m) * m


def _vmem_limit_bytes():
    """Generation-aware scoped-VMEM limit (~3/4 of physical, capped at 96 MiB)."""
    try:
        cap = int(pltpu.get_tpu_info().vmem_capacity_bytes)
    except Exception:
        cap = 64 * 1024 * 1024  # conservative fallback: v7x per-TC VMEM
    return min((cap * 3) // 4, 96 * 1024 * 1024)


def _choose_tile_rows(D, itemsize, vmem_budget):
    """Rows per tile (multiple of 32), sized so the whole working set fits.

    Per-row VMEM cost accounted:
      * 2 inputs x 2 pipeline buffers in native dtype:        4 * D * itemsize
      * in-kernel f32 upcasts / elementwise temporaries:      4 * D * 4
      * lane-padded (TB,1) f32 vectors (label x2 buffers,
        accumulator scratch, dot/s1/s2/sim/loss temps):       ~8 * 512
    """
    per_row = 4 * D * itemsize + 4 * D * 4 + 8 * 512
    tb = vmem_budget // per_row
    return max(32, (tb // 32) * 32)


def _cosine_loss_kernel(e1_ref, e2_ref, label_ref, out_ref, acc_ref, *, margin, eps):
    t = pl.program_id(1)          # tile index within this core ("arbitrary")
    nt = pl.num_programs(1)

    # Zero this core's resident (TB, 1) accumulator at the start of its sweep.
    @pl.when(t == 0)
    def _():
        acc_ref[...] = jnp.zeros_like(acc_ref)

    # Upcast in-kernel; inputs arrive in their native dtype (bf16 OK).
    e1 = e1_ref[...].astype(jnp.float32)    # (TB, D)
    e2 = e2_ref[...].astype(jnp.float32)    # (TB, D)

    dot = jnp.sum(e1 * e2, axis=1, keepdims=True)   # (TB, 1)
    s1 = jnp.sum(e1 * e1, axis=1, keepdims=True)    # (TB, 1)  squared norm
    s2 = jnp.sum(e2 * e2, axis=1, keepdims=True)    # (TB, 1)  squared norm

    # PyTorch cosine_similarity clamps each norm separately:
    #   sim = dot / (max(||e1||, eps) * max(||e2||, eps))
    #       = dot * rsqrt(max(s1, eps^2)) * rsqrt(max(s2, eps^2))   (EUP rsqrt)
    inv1 = jax.lax.rsqrt(jnp.maximum(s1, eps * eps))
    inv2 = jax.lax.rsqrt(jnp.maximum(s2, eps * eps))
    sim = dot * inv1 * inv2                          # (TB, 1)

    label = label_ref[...]                           # (TB, 1) f32, per-tile DMA

    # loss = (1 - label) * sim^2 + label * relu(margin - sim)^2
    hinge = jnp.maximum(margin - sim, 0.0)
    loss = (1.0 - label) * (sim * sim) + label * (hinge * hinge)   # (TB, 1)

    # Zero-padded rows (dot = 0, label = 0) contribute exactly 0 loss,
    # so no tail mask is needed.  Accumulate on the VPU only.
    acc_ref[...] += loss

    # Single cross-sublane reduction + lane-dense HBM writeback per core.
    @pl.when(t == nt - 1)
    def _():
        out_ref[...] = jnp.zeros_like(out_ref) + jnp.sum(acc_ref[...])


def cosine_similarity_loss(embed1, embed2, label, margin=0.5, eps=1e-8,
                           max_tile_rows=None):
    """Pallas implementation of CosineSimilarityLoss.forward.

    embed1, embed2: (B, D) arrays (f32 or bf16 — kept in native dtype)
    label:          (B,)   array of 0/1
    returns:        scalar f32 mean loss
    """
    B, D = embed1.shape
    itemsize = jnp.dtype(embed1.dtype).itemsize

    vmem_limit = _vmem_limit_bytes()
    budget = (vmem_limit * 3) // 4             # slack inside the scoped limit
    tb = _choose_tile_rows(D, itemsize, budget)
    if max_tile_rows is not None:              # testing hook to force multi-tile
        tb = min(tb, max(32, (int(max_tile_rows) // 32) * 32))
    tb = min(tb, _round_up(B, 32))             # never exceed the (padded) batch

    nt_total = _cdiv(B, tb)
    num_cores = 2 if nt_total >= 2 else 1      # only split when both halves get work
    nt = _cdiv(nt_total, num_cores)
    b_pad = num_cores * nt * tb

    if b_pad != B:
        pad = b_pad - B
        embed1 = jnp.pad(embed1, ((0, pad), (0, 0)))
        embed2 = jnp.pad(embed2, ((0, pad), (0, 0)))
        label = jnp.pad(jnp.ravel(label), (0, pad))
    label2d = jnp.reshape(label, (b_pad, 1)).astype(jnp.float32)

    kernel = functools.partial(_cosine_loss_kernel,
                               margin=float(margin), eps=float(eps))

    partial_blocks = pl.pallas_call(
        kernel,
        out_shape=jax.ShapeDtypeStruct((num_cores, 8, 128), jnp.float32),
        grid=(num_cores, nt),
        in_specs=[
            pl.BlockSpec((tb, D), lambda c, t: (c * nt + t, 0)),
            pl.BlockSpec((tb, D), lambda c, t: (c * nt + t, 0)),
            # Per-tile label block: tiny DMA, fully hidden behind embedding DMAs.
            pl.BlockSpec((tb, 1), lambda c, t: (c * nt + t, 0)),
        ],
        # One lane-dense (1,8,128) partial-sum block per core; constant over the
        # tile axis -> VMEM-resident, written back to HBM once per core.
        out_specs=pl.BlockSpec((1, 8, 128), lambda c, t: (c, 0, 0)),
        scratch_shapes=[pltpu.VMEM((tb, 1), jnp.float32)],
        compiler_params=pltpu.CompilerParams(
            # TODO(synk): on v7x, verify the leading "parallel" axis actually
            # shards across both TensorCores (profile); fall back to core_map
            # / CORE_PARALLEL if it does not.
            dimension_semantics=("parallel", "arbitrary"),
            vmem_limit_bytes=int(vmem_limit),
        ),
    )(embed1, embed2, label2d)

    # Each core's partial sum is replicated over its block; take [*,0,0] and mean.
    return jnp.sum(partial_blocks[:, 0, 0]) / jnp.float32(B)


if __name__ == "__main__":
    key = jax.random.PRNGKey(0)
    k1, k2, k3 = jax.random.split(key, 3)

    margin = 0.5

    def reference(e1, e2, lab, margin=0.5, eps=1e-8):
        e1 = e1.astype(jnp.float32)
        e2 = e2.astype(jnp.float32)
        dot = jnp.sum(e1 * e2, axis=1)
        n1 = jnp.linalg.norm(e1, axis=1)
        n2 = jnp.linalg.norm(e2, axis=1)
        # PyTorch semantics: clamp each norm separately.
        sim = dot / (jnp.maximum(n1, eps) * jnp.maximum(n2, eps))
        return jnp.mean((1.0 - lab) * sim ** 2
                        + lab * jnp.maximum(margin - sim, 0.0) ** 2)

    # --- small shape: B not a multiple of the tile size -> padding path ---
    B, D = 10, 32
    embed1_f32 = jax.random.normal(k1, (B, D), dtype=jnp.float32)
    embed2_f32 = jax.random.normal(k2, (B, D), dtype=jnp.float32)
    label = (jax.random.uniform(k3, (B,)) > 0.5).astype(jnp.float32)

    loss_f32 = jax.block_until_ready(
        cosine_similarity_loss(embed1_f32, embed2_f32, label, margin))
    ref_f32 = reference(embed1_f32, embed2_f32, label, margin)
    assert jnp.allclose(loss_f32, ref_f32, atol=1e-5, rtol=1e-5), (loss_f32, ref_f32)

    # bf16 inputs (kept bf16 into the kernel; math is f32 inside)
    e1_bf16 = embed1_f32.astype(jnp.bfloat16)
    e2_bf16 = embed2_f32.astype(jnp.bfloat16)
    loss_bf16 = jax.block_until_ready(
        cosine_similarity_loss(e1_bf16, e2_bf16, label, margin))
    ref_bf16 = reference(e1_bf16, e2_bf16, label, margin)
    assert jnp.allclose(loss_bf16, ref_bf16, atol=1e-4, rtol=1e-4), (loss_bf16, ref_bf16)

    # --- exercise the multi-tile / 2-core accumulation path (forced small TB) ---
    B2, D2 = 100, 32
    kk1, kk2, kk3 = jax.random.split(jax.random.PRNGKey(0), 3)
    a = jax.random.normal(kk1, (B2, D2), dtype=jnp.float32)
    b = jax.random.normal(kk2, (B2, D2), dtype=jnp.float32)
    lab2 = (jax.random.uniform(kk3, (B2,)) > 0.5).astype(jnp.float32)
    loss_mt = jax.block_until_ready(
        cosine_similarity_loss(a, b, lab2, margin, max_tile_rows=32))
    ref_mt = reference(a, b, lab2, margin)
    assert jnp.allclose(loss_mt, ref_mt, atol=1e-5, rtol=1e-5), (loss_mt, ref_mt)

    print("KERNEL_OK")
</pallas_src>

<mosaic_0001>
module attributes {stable_mosaic.version = 11 : i64} {
  func.func @_cosine_loss_kernel(%arg0: i32, %arg1: i32, %arg2: memref<32x32xf32, #tpu.memory_space<vmem>>, %arg3: memref<32x32xf32, #tpu.memory_space<vmem>>, %arg4: memref<32x1xf32, #tpu.memory_space<vmem>>, %arg5: memref<1x8x128xf32, #tpu.memory_space<vmem>>, %arg6: memref<32x1xf32, #tpu.memory_space<vmem>>) attributes {dimension_semantics = [#tpu.dimension_semantics<parallel>, #tpu.dimension_semantics<arbitrary>], iteration_bounds = array<i64: 1, 1>, scalar_prefetch = 0 : i64, scratch_operands = 1 : i64, tpu.core_type = #tpu.core_type<tc>, window_params = [{transform_indices = @transform_0, window_bounds = array<i64: 32, 32>}, {transform_indices = @transform_1, window_bounds = array<i64: 32, 32>}, {transform_indices = @transform_2, window_bounds = array<i64: 32, 1>}, {transform_indices = @transform_3, window_bounds = array<i64: 1, 8, 128>}]} {
    %c0_i32 = arith.constant 0 : i32
    %0 = arith.cmpi eq, %arg1, %c0_i32 : i32
    %1 = arith.extui %0 : i1 to i32
    %c0_i32_0 = arith.constant 0 : i32
    %2 = arith.cmpi ne, %1, %c0_i32_0 : i32
    scf.if %2 {
      %cst_19 = arith.constant 0.000000e+00 : f32
      %40 = vector.broadcast %cst_19 : f32 to vector<32x1xf32>
      %c0_20 = arith.constant 0 : index
      %c0_21 = arith.constant 0 : index
      %41 = vector.load %arg6[%c0_20, %c0_21] : memref<32x1xf32, #tpu.memory_space<vmem>>, vector<32x1xf32>
      tpu.vector_store %arg6[%c0_20, %c0_21], %40 {strides = array<i32>} : memref<32x1xf32, #tpu.memory_space<vmem>>, vector<32x1xf32>,
    } else {
    }
    %c0 = arith.constant 0 : index
    %c0_1 = arith.constant 0 : index
    %3 = vector.load %arg2[%c0, %c0_1] : memref<32x32xf32, #tpu.memory_space<vmem>>, vector<32x32xf32>
    %c0_2 = arith.constant 0 : index
    %c0_3 = arith.constant 0 : index
    %4 = vector.load %arg3[%c0_2, %c0_3] : memref<32x32xf32, #tpu.memory_space<vmem>>, vector<32x32xf32>
    %5 = arith.mulf %3, %4 : vector<32x32xf32>
    %cst = arith.constant dense<0.000000e+00> : vector<32xf32>
    %6 = vector.multi_reduction <add>, %5, %cst [1] : vector<32x32xf32> to vector<32xf32>
    %7 = vector.shape_cast %6 : vector<32xf32> to vector<32x1xf32>
    %8 = arith.mulf %3, %3 : vector<32x32xf32>
    %cst_4 = arith.constant dense<0.000000e+00> : vector<32xf32>
    %9 = vector.multi_reduction <add>, %8, %cst_4 [1] : vector<32x32xf32> to vector<32xf32>
    %10 = vector.shape_cast %9 : vector<32xf32> to vector<32x1xf32>
    %11 = arith.mulf %4, %4 : vector<32x32xf32>
    %cst_5 = arith.constant dense<0.000000e+00> : vector<32xf32>
    %12 = vector.multi_reduction <add>, %11, %cst_5 [1] : vector<32x32xf32> to vector<32xf32>
    %13 = vector.shape_cast %12 : vector<32xf32> to vector<32x1xf32>
    %cst_6 = arith.constant 1.000000e-16 : f32
    %14 = vector.broadcast %cst_6 : f32 to vector<32x1xf32>
    %15 = arith.maximumf %10, %14 : vector<32x1xf32>
    %16 = math.rsqrt %15 : vector<32x1xf32>
    %cst_7 = arith.constant 1.000000e-16 : f32
    %17 = vector.broadcast %cst_7 : f32 to vector<32x1xf32>
    %18 = arith.maximumf %13, %17 : vector<32x1xf32>
    %19 = math.rsqrt %18 : vector<32x1xf32>
    %20 = arith.mulf %7, %16 : vector<32x1xf32>
    %21 = arith.mulf %20, %19 : vector<32x1xf32>
    %c0_8 = arith.constant 0 : index
    %c0_9 = arith.constant 0 : index
    %22 = vector.load %arg4[%c0_8, %c0_9] : memref<32x1xf32, #tpu.memory_space<vmem>>, vector<32x1xf32>
    %cst_10 = arith.constant 5.000000e-01 : f32
    %23 = vector.broadcast %cst_10 : f32 to vector<32x1xf32>
    %24 = arith.subf %23, %21 : vector<32x1xf32>
    %cst_11 = arith.constant 0.000000e+00 : f32
    %25 = vector.broadcast %cst_11 : f32 to vector<32x1xf32>
    %26 = arith.maximumf %24, %25 : vector<32x1xf32>
    %cst_12 = arith.constant 1.000000e+00 : f32
    %27 = vector.broadcast %cst_12 : f32 to vector<32x1xf32>
    %28 = arith.subf %27, %22 : vector<32x1xf32>
    %29 = arith.mulf %21, %21 : vector<32x1xf32>
    %30 = arith.mulf %28, %29 : vector<32x1xf32>
    %31 = arith.mulf %26, %26 : vector<32x1xf32>
    %32 = arith.mulf %22, %31 : vector<32x1xf32>
    %33 = arith.addf %30, %32 : vector<32x1xf32>
    %c0_13 = arith.constant 0 : index
    %c0_14 = arith.constant 0 : index
    %34 = vector.load %arg6[%c0_13, %c0_14] : memref<32x1xf32, #tpu.memory_space<vmem>>, vector<32x1xf32>
    %35 = arith.addf %34, %33 : vector<32x1xf32>
    %c0_15 = arith.constant 0 : index
    %c0_16 = arith.constant 0 : index
    %36 = vector.load %arg6[%c0_15, %c0_16] : memref<32x1xf32, #tpu.memory_space<vmem>>, vector<32x1xf32>
    tpu.vector_store %arg6[%c0_15, %c0_16], %35 {strides = array<i32>} : memref<32x1xf32, #tpu.memory_space<vmem>>, vector<32x1xf32>,
    %c0_i32_17 = arith.constant 0 : i32
    %37 = arith.cmpi eq, %arg1, %c0_i32_17 : i32
    %38 = arith.extui %37 : i1 to i32
    %c0_i32_18 = arith.constant 0 : i32
    %39 = arith.cmpi ne, %38, %c0_i32_18 : i32
    scf.if %39 {
      %cst_19 = arith.constant 0.000000e+00 : f32
      %40 = vector.broadcast %cst_19 : f32 to vector<1x8x128xf32>
      %c0_20 = arith.constant 0 : index
      %c0_21 = arith.constant 0 : index
      %41 = vector.load %arg6[%c0_20, %c0_21] : memref<32x1xf32, #tpu.memory_space<vmem>>, vector<32x1xf32>
      %42 = vector.shape_cast %41 : vector<32x1xf32> to vector<1x32x1xf32>
      %cst_22 = arith.constant dense<0.000000e+00> : vector<1xf32>
      %43 = vector.multi_reduction <add>, %42, %cst_22 [1, 2] : vector<1x32x1xf32> to vector<1xf32>
      %44 = vector.shape_cast %43 : vector<1xf32> to vector<1x1x1xf32>
      %45 = vector.extract %44[0, 0, 0] : f32 from vector<1x1x1xf32>
      %46 = vector.broadcast %45 : f32 to vector<1x8x128xf32>
      %47 = arith.addf %40, %46 : vector<1x8x128xf32>
      %c0_23 = arith.constant 0 : index
      %c0_24 = arith.constant 0 : index
      %c0_25 = arith.constant 0 : index
      %48 = vector.load %arg5[%c0_23, %c0_24, %c0_25] : memref<1x8x128xf32, #tpu.memory_space<vmem>>, vector<1x8x128xf32>
      tpu.vector_store %arg5[%c0_23, %c0_24, %c0_25], %47 {strides = array<i32>} : memref<1x8x128xf32, #tpu.memory_space<vmem>>, vector<1x8x128xf32>,
    } else {
    }
    return
  }
  func.func @transform_0(%arg0: i32, %arg1: i32) -> (i32, i32) {
    %c1_i32 = arith.constant 1 : i32
    %0 = arith.muli %arg0, %c1_i32 : i32
    %1 = arith.addi %0, %arg1 : i32
    %c0_i32 = arith.constant 0 : i32
    %c0_i32_0 = arith.constant 0 : i32
    return %1, %c0_i32 : i32, i32
  }
  func.func @transform_1(%arg0: i32, %arg1: i32) -> (i32, i32) {
    %c1_i32 = arith.constant 1 : i32
    %0 = arith.muli %arg0, %c1_i32 : i32
    %1 = arith.addi %0, %arg1 : i32
    %c0_i32 = arith.constant 0 : i32
    %c0_i32_0 = arith.constant 0 : i32
    return %1, %c0_i32 : i32, i32
  }
  func.func @transform_2(%arg0: i32, %arg1: i32) -> (i32, i32) {
    %c1_i32 = arith.constant 1 : i32
    %0 = arith.muli %arg0, %c1_i32 : i32
    %1 = arith.addi %0, %arg1 : i32
    %c0_i32 = arith.constant 0 : i32
    %c0_i32_0 = arith.constant 0 : i32
    return %1, %c0_i32 : i32, i32
  }
  func.func @transform_3(%arg0: i32, %arg1: i32) -> (i32, i32, i32) {
    %c0_i32 = arith.constant 0 : i32
    %c0_i32_0 = arith.constant 0 : i32
    %c0_i32_1 = arith.constant 0 : i32
    return %arg0, %c0_i32, %c0_i32_0 : i32, i32, i32
  }
}

</mosaic_0001>

<bundles_post_ra>
// kernel: tpu_custom_call.1
= control target key start
LH: loop header
LB: loop body
LE: loop exit
PB: predicated region body
PF: predicated region fallthrough
CT: control target
= control target key end

     0   :  { %8 = vsyncpa [#allocation4], 0  ;;  %s417_s0 = inlined_call_operand.vmem [shape: f32[32,32], index: 0, kind: input, shape index: {}]   ;;  %s418_s1 = inlined_call_operand.hbm [shape: f32[32,32], index: 1, kind: input, shape index: {}]   ;;  %s419_s2 = inlined_call_operand.vmem [shape: f32[32,1], index: 2, kind: input, shape index: {}]   ;;  %s420_s3 = inlined_call_operand.hbm [shape: f32[1,8,128], index: 3, kind: output, shape index: {}]  }
   0x1   :  { %9 = vsyncpa [#allocation5], 0  ;;  %s338_s12 = smov [#allocation3]  }
   0x2   :  { %s29_s13 = sshll.u32 %s338_s12, 4  ;;  %s30_s13 = int_to_ptr.vmem [resolvable:$true] %s29_s13 }
   0x3   :  { %s302_s14 = scalar_lea.vmem %s30_s13, 512  ;;  %p307_p1 = scmp.lt.s32.totalorder %s30_s13, %s30_s13 }
   0x4   :  { %p303_p0 = scmp.ne.s32.totalorder %s30_s13, %s302_s14  ;;  %p308_p2 = scmp.lt.s32.totalorder %s302_s14, %s302_s14 }
   0x6   :  { %p309_p3 = por %p308_p2, %p307_p1 }
   0x8   :  { %p310_p4 = pnand %p309_p3, %p303_p0 }
   0xa   :  { %313 = shalt.err (!%p310_p4)
}
   0xb   :  { %s339_s15 = smov 128   ;;  %s340_s16 = smov 8  }
   0xc   :  { %35 = dma.hbm_to_vmem [thread:$0]  %s418_s1, 512, %s30_s13, [#allocation4], %s339_s15, %s339_s15, %s340_s16  }
   0xd   :  { %334 = dma.done.wait [#allocation4], 512  }
   0xe   :  { %335 = vsyncadd [#allocation4], 4294966784  ;;  %v90_v0 = vld [vmem:[%s417_s0 + $0x10] sm:$0xff]  ;;  %vm100_vm0 = vcmask 261120   ;;  %v88_v1 = vld [vmem:[%s417_s0] sm:$0xff]  ;;  %vm83_vm1 = vcmask 7168  }
   0xf   :  { %v92_v2 = vld [vmem:[#allocation3] sm:$0xff]  ;;  %v115_v3 = vmul.f32 %v90_v0, %v90_v0  ;;  %v113_v4 = vmul.f32 %v88_v1, %v88_v1  ;;  %v89_v6 = vld [vmem:[%s417_s0 + $0x8] sm:$0xff]  ;;  %v91_v8 = vld [vmem:[%s417_s0 + $0x18] sm:$0xff]  ;;  %v341_v32 = vmov 0.0  }
  0x10   :  { %v129_v5 = vmul.f32 %v92_v2, %v92_v2  ;;  %v114_v7 = vmul.f32 %v89_v6, %v89_v6  ;;  %v93_v9 = vld [vmem:[#allocation3 + $0x8] sm:$0xff]  ;;  %v116_v14 = vmul.f32 %v91_v8, %v91_v8  ;;  %v95_v16 = vld [vmem:[#allocation3 + $0x18] sm:$0xff]  ;;  %v94_v17 = vld [vmem:[#allocation3 + $0x10] sm:$0xff]  ;;  %v96_v24 = vmul.f32 %v92_v2, %v88_v1  ;;  %84 = vst.msk [vmem:[#allocation2] sm:$0xff] %vm83_vm1, %v341_v32 }
  0x11   :  { %v123_v10 = vsel %vm100_vm0, %v115_v3, 0.0  ;;  %v117_v11 = vsel %vm100_vm0, %v113_v4, 0.0  ;;  %v130_v15 = vmul.f32 %v93_v9, %v93_v9  ;;  %v132_v20 = vmul.f32 %v95_v16, %v95_v16  ;;  %85 = vst.msk [vmem:[#allocation2 + $0x8] sm:$0xff] %vm83_vm1, %v341_v32  ;;  %86 = vst.msk [vmem:[#allocation2 + $0x10] sm:$0xff] %vm83_vm1, %v341_v32  ;;  %v169_v56 = vld [vmem:[%s419_s2] sm:$0xff] }
  0x12   :  { %124 = vadd.xlane.f32.xlu1 %v123_v10  ;;  %118 = vadd.xlane.f32.xlu0 %v117_v11  ;;  %v133_v12 = vsel %vm100_vm0, %v129_v5, 0.0  ;;  %v120_v13 = vsel %vm100_vm0, %v114_v7, 0.0  ;;  %v126_v18 = vsel %vm100_vm0, %v116_v14, 0.0  ;;  %v131_v21 = vmul.f32 %v94_v17, %v94_v17  ;;  %87 = vst.msk [vmem:[#allocation2 + $0x18] sm:$0xff] %vm83_vm1, %v341_v32 }
  0x13   :  { %v136_v19 = vsel %vm100_vm0, %v130_v15, 0.0  ;;  %v142_v22 = vsel %vm100_vm0, %v132_v20, 0.0  ;;  %v97_v25 = vmul.f32 %v93_v9, %v89_v6  ;;  %v101_v26 = vsel %vm100_vm0, %v96_v24, 0.0  ;;  %v170_v6 = vld [vmem:[%s419_s2 + $0x8] sm:$0xff]  ;;  %v172_v20 = vld [vmem:[%s419_s2 + $0x18] sm:$0xff] }
  0x14   :  { %v139_v23 = vsel %vm100_vm0, %v131_v21, 0.0  ;;  %v98_v28 = vmul.f32 %v94_v17, %v90_v0  ;;  %v99_v29 = vmul.f32 %v95_v16, %v91_v8  ;;  %v181_v62 = vsub.f32 1.0, %v169_v56 }
  0x15   :  { %v104_v27 = vsel %vm100_vm0, %v97_v25, 0.0  ;;  %v182_v16 = vsub.f32 1.0, %v170_v6 }
  0x16   :  { %134 = vadd.xlane.f32.xlu1 %v133_v12  ;;  %121 = vadd.xlane.f32.xlu0 %v120_v13  ;;  %v107_v30 = vsel %vm100_vm0, %v98_v28, 0.0  ;;  %v110_v31 = vsel %vm100_vm0, %v99_v29, 0.0  ;;  %v171_v13 = vld [vmem:[%s419_s2 + $0x10] sm:$0xff]  ;;  %s342_s2 = smov [#allocation6]  }
  0x17   :  { %v205_v15 = vld [vmem:[#allocation2] sm:$0xff]  ;;  %v183_v24 = vsub.f32 1.0, %v171_v13  ;;  %s250_s6 = sshll.u32 %s342_s2, 4  ;;  %s251_s6 = int_to_ptr.vmem [resolvable:$true] %s250_s6 }
  0x18   :  { %s314_s8 = scalar_lea.vmem %s251_s6, 128  ;;  %p319_p6 = scmp.lt.s32.totalorder %s251_s6, %s251_s6 }
  0x19   :  { %p315_p5 = scmp.ne.s32.totalorder %s251_s6, %s314_s8  ;;  %p320_p7 = scmp.lt.s32.totalorder %s314_s8, %s314_s8 }
  0x1a   :  { %127 = vadd.xlane.f32.xlu1 %v126_v18  ;;  %137 = vadd.xlane.f32.xlu0 %v136_v19 }
  0x1b   :  { %p321_p8 = por %p320_p7, %p319_p6 }
  0x1d   :  { %p322_p9 = pnand %p321_p8, %p315_p5 }
  0x1e   :  { %143 = vadd.xlane.f32.xlu1 %v142_v22  ;;  %140 = vadd.xlane.f32.xlu0 %v139_v23 }
  0x22   :  { %102 = vadd.xlane.f32.xlu0 %v101_v26  ;;  %105 = vadd.xlane.f32.xlu1 %v104_v27  ;;  %v184_v27 = vsub.f32 1.0, %v172_v20 }
  0x26   :  { %108 = vadd.xlane.f32.xlu0 %v107_v30  ;;  %111 = vadd.xlane.f32.xlu1 %v110_v31 }
  0x9b   :  { %v125_v33 = vpop.xlane.xlu1 %124  ;;  %v119_v34 = vpop.xlane.xlu0 %118 }
  0x9c   :  { %v145_v35 = vmax.f32 %v119_v34, 1e-16  ;;  %v147_v44 = vmax.f32 %v125_v33, 1e-16  ;;  %v206_v34 = vld [vmem:[#allocation2 + $0x8] sm:$0xff] }
  0x9e   :  { %278 = vrsqrt.f32 %v145_v35 }
  0x9f   :  { %v135_v36 = vpop.xlane.xlu1 %134  ;;  %v122_v37 = vpop.xlane.xlu0 %121 }
  0xa0   :  { %v153_v38 = vmax.f32 %v135_v36, 1e-16  ;;  %v146_v39 = vmax.f32 %v122_v37, 1e-16 }
  0xa2   :  { %280 = vrsqrt.f32 %v153_v38 }
  0xa3   :  { %282 = vrsqrt.f32 %v146_v39  ;;  %v128_v40 = vpop.xlane.xlu1 %127  ;;  %v138_v41 = vpop.xlane.xlu0 %137 }
  0xa4   :  { %v148_v42 = vmax.f32 %v128_v40, 1e-16  ;;  %v154_v43 = vmax.f32 %v138_v41, 1e-16 }
  0xa6   :  { %284 = vrsqrt.f32 %v148_v42 }
  0xa7   :  { %286 = vrsqrt.f32 %v154_v43  ;;  %v144_v45 = vpop.xlane.xlu1 %143  ;;  %v141_v46 = vpop.xlane.xlu0 %140  ;;  %v208_v43 = vld [vmem:[#allocation2 + $0x18] sm:$0xff] }
  0xa8   :  { %v156_v47 = vmax.f32 %v144_v45, 1e-16  ;;  %v155_v48 = vmax.f32 %v141_v46, 1e-16  ;;  %288 = vrsqrt.f32 %v147_v44  ;;  %v207_v44 = vld [vmem:[#allocation2 + $0x10] sm:$0xff] }
  0xaa   :  { %290 = vrsqrt.f32 %v156_v47 }
  0xab   :  { %292 = vrsqrt.f32 %v155_v48  ;;  %v103_v49 = vpop.xlane.xlu0 %102  ;;  %v279_v50 = vpop.eup %278 }
  0xac   :  { %v106_v51 = vpop.xlane.xlu1 %105  ;;  %v161_v52 = vmul.f32 %v279_v50, %v103_v49 }
  0xaf   :  { %v281_v53 = vpop.eup %280  ;;  %v109_v1 = vpop.xlane.xlu0 %108 }
  0xb0   :  { %v283_v54 = vpop.eup %282  ;;  %v165_v55 = vmul.f32 %v281_v53, %v161_v52  ;;  %v112_v57 = vpop.xlane.xlu1 %111 }
  0xb1   :  { %v162_v60 = vmul.f32 %v283_v54, %v106_v51 }
  0xb2   :  { %v173_v58 = vsub.f32 0.5, %v165_v55  ;;  %v185_v0 = vmul.f32 %v165_v55, %v165_v55 }
  0xb3   :  { %v285_v59 = vpop.eup %284 }
  0xb4   :  { %v287_v61 = vpop.eup %286  ;;  %v177_v63 = vmax.f32 %v173_v58, 0.0  ;;  %v164_v2 = vmul.f32 %v285_v59, %v112_v57  ;;  %v189_v11 = vmul.f32 %v185_v0, %v181_v62 }
  0xb5   :  { %v166_v3 = vmul.f32 %v287_v61, %v162_v60  ;;  %v289_v4 = vpop.eup %288 }
  0xb6   :  { %v193_v5 = vmul.f32 %v177_v63, %v177_v63  ;;  %v163_v9 = vmul.f32 %v289_v4, %v109_v1 }
  0xb7   :  { %v291_v7 = vpop.eup %290  ;;  %v174_v8 = vsub.f32 0.5, %v166_v3  ;;  %v186_v18 = vmul.f32 %v166_v3, %v166_v3 }
  0xb8   :  { %v293_v10 = vpop.eup %292  ;;  %v197_v12 = vmul.f32 %v193_v5, %v169_v56  ;;  %v168_v14 = vmul.f32 %v291_v7, %v164_v2 }
  0xb9   :  { %v178_v17 = vmax.f32 %v174_v8, 0.0  ;;  %v167_v19 = vmul.f32 %v293_v10, %v163_v9  ;;  %v190_v30 = vmul.f32 %v186_v18, %v182_v16 }
  0xba   :  { %v201_v21 = vadd.f32 %v197_v12, %v189_v11  ;;  %v176_v22 = vsub.f32 0.5, %v168_v14  ;;  %v188_v29 = vmul.f32 %v168_v14, %v168_v14 }
  0xbb   :  { %v194_v23 = vmul.f32 %v178_v17, %v178_v17  ;;  %v175_v25 = vsub.f32 0.5, %v167_v19  ;;  %v187_v33 = vmul.f32 %v167_v19, %v167_v19 }
  0xbc   :  { %v209_v26 = vadd.f32 %v205_v15, %v201_v21  ;;  %v180_v28 = vmax.f32 %v176_v22, 0.0  ;;  %v192_v38 = vmul.f32 %v188_v29, %v184_v27 }
  0xbd   :  { %v198_v31 = vmul.f32 %v194_v23, %v170_v6  ;;  %v179_v32 = vmax.f32 %v175_v25, 0.0  ;;  %v191_v41 = vmul.f32 %v187_v33, %v183_v24 }
  0xbe   :  { %214 = vst.msk [vmem:[#allocation2] sm:$0xff] %vm83_vm1, %v209_v26  ;;  %v196_v35 = vmul.f32 %v180_v28, %v180_v28 }
  0xbf   :  { %v202_v36 = vadd.f32 %v198_v31, %v190_v30  ;;  %v195_v37 = vmul.f32 %v179_v32, %v179_v32 }
  0xc0   :  { %v200_v39 = vmul.f32 %v196_v35, %v172_v20 }
  0xc1   :  { %v210_v40 = vadd.f32 %v206_v34, %v202_v36  ;;  %v199_v42 = vmul.f32 %v195_v37, %v171_v13 }
  0xc2   :  { %v204_v45 = vadd.f32 %v200_v39, %v192_v38 }
  0xc3   :  { %215 = vst.msk [vmem:[#allocation2 + $0x8] sm:$0xff] %vm83_vm1, %v210_v40  ;;  %v203_v46 = vadd.f32 %v199_v42, %v191_v41 }
  0xc4   :  { %v212_v47 = vadd.f32 %v208_v43, %v204_v45 }
  0xc5   :  { %v211_v48 = vadd.f32 %v207_v44, %v203_v46  ;;  %v221_v49 = vld [vmem:[#allocation2] sm:$0xff] }
  0xc6   :  { %217 = vst.msk [vmem:[#allocation2 + $0x18] sm:$0xff] %vm83_vm1, %v212_v47  ;;  %v225_v52 = vsel %vm83_vm1, %v221_v49, 0.0 }
  0xc7   :  { %216 = vst.msk [vmem:[#allocation2 + $0x10] sm:$0xff] %vm83_vm1, %v211_v48 }
  0xca   :  { %v222_v50 = vld [vmem:[#allocation2 + $0x8] sm:$0xff] }
  0xcb   :  { %v226_v51 = vsel %vm83_vm1, %v222_v50, 0.0 }
  0xcc   :  { %v227_v55 = vadd.f32 %v226_v51, %v225_v52 }
  0xcd   :  { %v224_v54 = vld [vmem:[#allocation2 + $0x18] sm:$0xff] }
  0xce   :  { %v223_v53 = vld [vmem:[#allocation2 + $0x10] sm:$0xff]  ;;  %v230_v58 = vsel %vm83_vm1, %v224_v54, 0.0 }
  0xcf   :  { %v228_v56 = vsel %vm83_vm1, %v223_v53, 0.0 }
  0xd0   :  { %v229_v57 = vadd.f32 %v228_v56, %v227_v55 }
  0xd2   :  { %v231_v59 = vadd.f32 %v230_v58, %v229_v57 }
  0xd4   :  { %232 = vadd.xlane.f32.xlu0 %v231_v59 }
 0x15d   :  { %v233_v60 = vpop.xlane.xlu0 %232 }
 0x15e   :  { %v234_v61 = vrot.slane %v233_v60, 4 }
 0x160   :  { %v235_v62 = vadd.f32 %v234_v61, %v233_v60 }
 0x162   :  { %v236_v63 = vrot.slane %v235_v62, 2 }
 0x164   :  { %v237_v0 = vadd.f32 %v236_v63, %v235_v62 }
 0x166   :  { %v238_v1 = vrot.slane %v237_v0, 1 }
 0x168   :  { %v239_v2 = vadd.f32 %v238_v1, %v237_v0 }
 0x16a   :  { %271 = vpush %v239_v2 }
 0x19b   :  { %s272_s7 = spop %271 }
 0x19c   :  { %v241_v3 = vstv %s272_s7 }
 0x19d   :  { %243 = vst [vmem:[#allocation6] sm:$0xff] %v241_v3 }
 0x19e   :  { %325 = shalt.err (!%p322_p9)
}
 0x19f   :  { %253 = dma.vmem_to_hbm [thread:$0]  %s251_s6, 128, %s420_s3, [#allocation5]  }
 0x1a0   :  { %336 = dma.done.wait [#allocation5], 128  }
 0x1a1   :  { %337 = vsyncadd [#allocation5], 4294967168 }
 0x1a2   :  { %257 = vsyncpa [#allocation4], 1 }
 0x1a3   :  { %258 = vsyncpa [#allocation5], 1 }

</bundles_post_ra>
